<compile_context>
chip_gen: v5e
topology: v5e:2x2
jax: 0.10.0
libtpu: 0.0.40
codegen_flags: <defaults>
</compile_context>

<pallas_src>
import functools

import jax
import jax.numpy as jnp
from jax.experimental import pallas as pl
from jax.experimental.pallas import tpu as pltpu


def _round_up(x: int, m: int) -> int:
    return (x + m - 1) // m * m


# ----------------------------------------------------------------------------
# Generation-aware tile configuration
# ----------------------------------------------------------------------------
def _chip_generation() -> str:
    try:
        kind = jax.devices()[0].device_kind.lower()
    except Exception:
        return "unknown"
    if "v7" in kind:
        return "v7x"
    if "v6" in kind:
        return "v6e"
    if "v5" in kind:
        return "v5e"
    return "unknown"


# generation: (tm_default, tn_default, tk_default, vmem_limit_bytes)
#   v6e : 918 TF/s / ~1.4 TB/s -> need ~650 flop/B; 1024x2048 gives ~682.
#   v7x : 3.2 TB/s HBM but only 64 MiB VMEM -> 512x1024 (~341 flop/B) suffices.
#   v5e : 197 TF/s / 0.82 TB/s -> ~240 flop/B; 512x512 gives 256.
_TILE_TABLE = {
    "v6e": (1024, 2048, 512, 64 << 20),
    "v7x": (512, 1024, 512, 48 << 20),
    "v5e": (512, 512, 512, 32 << 20),
    "unknown": (512, 512, 512, 32 << 20),
}


def _tile_config(d_in: int, d_out: int):
    tm_d, tn_d, tk_d, vmem = _TILE_TABLE[_chip_generation()]
    tn = min(tn_d, _round_up(d_out, 128))   # lane-aligned
    tk = min(tk_d, _round_up(d_in, 128))    # lane-aligned
    return tm_d, tn, tk, vmem


def prepare_affine_params(w, b, tn: int, tk: int):
    """Pad + cast W (bf16) and bias (f32, row vector) ONCE, tile-aligned."""
    d_in, d_out = w.shape
    kp, np_ = _round_up(d_in, tk), _round_up(d_out, tn)
    wp = jnp.pad(w, ((0, kp - d_in), (0, np_ - d_out))).astype(jnp.bfloat16)
    bp = jnp.pad(b.astype(jnp.float32).reshape(1, -1), ((0, 0), (0, np_ - d_out)))
    return wp, bp


# ----------------------------------------------------------------------------
# Pallas kernels: tiled affine forward  y = x @ W + b
# ----------------------------------------------------------------------------
def _affine_kernel_f32(x_ref, w_ref, b_ref, o_ref):
    # f32 output: accumulate directly into the k-invariant output block
    # (VMEM-resident across the K axis) — no separate scratch accumulator.
    @pl.when(pl.program_id(2) == 0)
    def _init():
        # Bias folded into the accumulator init (added exactly once).
        o_ref[...] = jnp.broadcast_to(b_ref[...], o_ref.shape)

    o_ref[...] += jnp.dot(x_ref[...], w_ref[...],
                          preferred_element_type=jnp.float32)


def _affine_kernel_acc(x_ref, w_ref, b_ref, o_ref, acc_ref):
    # Non-f32 output: f32 VMEM accumulator, cast once in the K-epilogue.
    k = pl.program_id(2)

    @pl.when(k == 0)
    def _init():
        acc_ref[...] = jnp.broadcast_to(b_ref[...], acc_ref.shape)

    acc_ref[...] += jnp.dot(x_ref[...], w_ref[...],
                            preferred_element_type=jnp.float32)

    @pl.when(k == pl.num_programs(2) - 1)
    def _finalize():
        o_ref[...] = acc_ref[...].astype(o_ref.dtype)


@functools.partial(
    jax.jit,
    static_argnames=("d_out", "tm_default", "tn", "tk", "vmem_limit", "out_dtype"))
def affine_forward_pallas(x, wp, bp, *, d_out, tm_default, tn, tk,
                          vmem_limit, out_dtype=jnp.float32):
    """Tiled (M, N, K) matmul + bias.  wp/bp are pre-padded (bf16 / f32)."""
    B, d_in = x.shape
    kp, np_ = wp.shape
    assert kp % tk == 0 and np_ % tn == 0 and d_in <= kp

    # tm: multiple of 16 (bf16 packs 16 rows per sublane group), clamped to B.
    tm = min(tm_default, _round_up(B, 16))
    bp_rows = _round_up(B, tm)

    # Megacore: guarantee >= 2 blocks on the parallel (M, N) axes so both
    # TensorCores get work; tn stays a 128-multiple and a divisor of np_.
    tn_eff = tn
    while (bp_rows // tm) * (np_ // tn_eff) < 2 and tn_eff % 256 == 0:
        tn_eff //= 2

    # Pad x only when actually needed; cast to bf16 for the MXU's native rate.
    xp = x
    if bp_rows != B or kp != d_in:
        xp = jnp.pad(x, ((0, bp_rows - B), (0, kp - d_in)))
    xp = xp.astype(jnp.bfloat16)

    grid = (bp_rows // tm, np_ // tn_eff, kp // tk)
    grid_m, grid_n, _ = grid

    out_itemsize = jnp.dtype(out_dtype).itemsize
    cost = pl.CostEstimate(
        flops=2 * bp_rows * kp * np_,
        transcendentals=0,
        # Count re-streaming: x is read once per N tile, W once per M tile.
        bytes_accessed=(xp.size * xp.dtype.itemsize * grid_n
                        + wp.size * wp.dtype.itemsize * grid_m
                        + bp.size * bp.dtype.itemsize * grid_m
                        + bp_rows * np_ * out_itemsize),
    )

    if jnp.dtype(out_dtype) == jnp.dtype(jnp.float32):
        kernel = _affine_kernel_f32
        scratch_shapes = []
    else:
        kernel = _affine_kernel_acc
        scratch_shapes = [pltpu.VMEM((tm, tn_eff), jnp.float32)]

    out = pl.pallas_call(
        kernel,
        out_shape=jax.ShapeDtypeStruct((bp_rows, np_), out_dtype),
        grid_spec=pltpu.PrefetchScalarGridSpec(
            num_scalar_prefetch=0,
            grid=grid,
            in_specs=[
                pl.BlockSpec((tm, tk), lambda i, j, k: (i, k)),      # x tiles
                pl.BlockSpec((tk, tn_eff), lambda i, j, k: (k, j)),  # W tiles
                pl.BlockSpec((1, tn_eff), lambda i, j, k: (0, j)),   # bias tile
            ],
            out_specs=pl.BlockSpec((tm, tn_eff), lambda i, j, k: (i, j)),
            scratch_shapes=scratch_shapes,
        ),
        compiler_params=pltpu.CompilerParams(
            dimension_semantics=("parallel", "parallel", "arbitrary"),
            vmem_limit_bytes=vmem_limit,
        ),
        cost_estimate=cost,
    )(xp, wp, bp)

    return out[:B, :d_out]


def affine_forward(x, w, b, out_dtype=jnp.float32):
    """Standalone convenience: config + pad/cast + Pallas call."""
    d_in, d_out = w.shape
    tm_d, tn, tk, vmem = _tile_config(d_in, d_out)
    wp, bpad = prepare_affine_params(w, b, tn, tk)
    return affine_forward_pallas(x, wp, bpad, d_out=d_out, tm_default=tm_d,
                                 tn=tn, tk=tk, vmem_limit=vmem,
                                 out_dtype=out_dtype)


# Below this much work, pallas_call launch + DMA setup dominates; XLA's fused
# dot is strictly faster (also covers the (1,)+input_shape output_shape probe).
_PALLAS_MIN_WORK = 128 * 128 * 128


# ----------------------------------------------------------------------------
# JAX-side BaseModule mirror (Python glue; compute lives in the kernel above)
# ----------------------------------------------------------------------------
class BaseModuleJAX:
    """Minimal concrete realization of neurevo BaseModule in JAX/Pallas."""

    def __init__(self, input_shape, out_features=None, seed=0):
        self.input_shape = tuple(input_shape)
        self._output_shape = None
        self.connected_modules = {"input": [], "output": []}
        self._seed = seed
        self._init_params(int(out_features) if out_features is not None
                          else int(self.input_shape[0]))

    def _init_params(self, out_features):
        in_features = int(self.input_shape[0])
        kw, kb = jax.random.split(jax.random.PRNGKey(self._seed))
        scale = 1.0 / jnp.sqrt(jnp.float32(in_features))
        self.w = (jax.random.normal(kw, (in_features, out_features),
                                    jnp.float32) * scale)
        self.b = jax.random.normal(kb, (out_features,), jnp.float32) * 0.01
        # Cache generation-sized tiles + bf16 tile-padded W / f32 padded bias
        # so forward never re-pads or re-casts the weights.
        tm_d, tn, tk, vmem = _tile_config(in_features, out_features)
        self._cfg = dict(tm_default=tm_d, tn=tn, tk=tk, vmem_limit=vmem,
                         out_dtype=jnp.float32)
        self._wp, self._bp = prepare_affine_params(self.w, self.b, tn, tk)

    # --- forward: Pallas kernel hot path ------------------------------------
    def forward(self, x):
        B, d_in = x.shape
        d_out = self.w.shape[1]
        if B * d_in * d_out < _PALLAS_MIN_WORK:
            return x @ self.w + self.b          # tiny: XLA fused dot wins
        return affine_forward_pallas(x, self._wp, self._bp, d_out=d_out,
                                     **self._cfg)

    __call__ = forward

    # --- output_shape: probes forward with a (1,)+input_shape dummy ----------
    @property
    def output_shape(self):
        if self._output_shape is None:
            dummy = jnp.zeros((1,) + self.input_shape, jnp.float32)
            out = self.forward(dummy)
            self._output_shape = tuple(out.shape[1:])
        return self._output_shape

    # --- graph bookkeeping (pure Python, no kernel equivalent) ---------------
    def connect_to_input(self, module):
        if module not in self.connected_modules["input"]:
            self.connected_modules["input"].append(module)
            module.connect_to_output(self)

    def connect_to_output(self, module):
        if module not in self.connected_modules["output"]:
            self.connected_modules["output"].append(module)

    def dimension_changed(self, in_features, out_features, source_module=None):
        if source_module in self.connected_modules["input"]:
            if len(self.input_shape) == 1:
                self.update_input_shape((out_features,))

    def update_input_shape(self, new_input_shape):
        if tuple(new_input_shape) == self.input_shape:
            return
        self.input_shape = tuple(new_input_shape)
        self._output_shape = None
        self.adapt_to_input_shape()
        _ = self.output_shape
        for module in self.connected_modules["output"]:
            if hasattr(module, "dimension_changed"):
                module.dimension_changed(
                    self.input_shape[0], self._output_shape[0], self)

    def adapt_to_input_shape(self):
        # Re-create parameters (and cached padded weights) for new in_features.
        self._init_params(int(self.w.shape[1]))

    # --- trivial scalar hooks -------------------------------------------------
    def compute_loss(self, *args, **kwargs):
        return jnp.float32(0.0)

    def get_intrinsic_reward(self, *args, **kwargs):
        return jnp.float32(0.0)

    def reset(self):
        pass

    def summary(self):
        return {
            "name": self.__class__.__name__,
            "input_shape": self.input_shape,
            "output_shape": self.output_shape,
            "parameters": int(self.w.size + self.b.size),
            "connected_modules": {
                "input": [m.__class__.__name__
                          for m in self.connected_modules["input"]],
                "output": [m.__class__.__name__
                           for m in self.connected_modules["output"]],
            },
        }


# ----------------------------------------------------------------------------
# Demo / smoke test
# ----------------------------------------------------------------------------
if __name__ == "__main__":
    # Flat-feature module: activations are [batch, features].  Small shapes.
    batch, in_features, out_features = 32, 128, 128

    key = jax.random.PRNGKey(0)
    kx, kw2, kb2, kx2 = jax.random.split(key, 4)

    module = BaseModuleJAX(input_shape=(in_features,),
                           out_features=out_features, seed=0)
    x = jax.random.normal(kx, (batch, in_features), jnp.float32)

    # 1) Run the Pallas kernel directly on the small inputs.
    y = jax.block_until_ready(affine_forward(x, module.w, module.b))
    y_ref = x @ module.w + module.b
    assert y.shape == (batch, out_features)
    assert jnp.allclose(y, y_ref, atol=1e-1, rtol=1e-1), float(
        jnp.max(jnp.abs(y - y_ref)))

    # 2) Non-tile-aligned shapes exercise the padding path (M, K, N tails).
    w2 = jax.random.normal(kw2, (100, 72), jnp.float32) * 0.1
    b2 = jax.random.normal(kb2, (72,), jnp.float32) * 0.01
    x2 = jax.random.normal(kx2, (27, 100), jnp.float32)
    y2 = jax.block_until_ready(affine_forward(x2, w2, b2))
    assert y2.shape == (27, 72)
    assert jnp.allclose(y2, x2 @ w2 + b2, atol=1e-1, rtol=1e-1)

    # 3) Module forward through the cached-weight Pallas path.
    xb = jax.random.normal(jax.random.PRNGKey(1), (128, in_features),
                           jnp.float32)
    yb = jax.block_until_ready(module(xb))
    assert yb.shape == (128, out_features)
    assert jnp.allclose(yb, xb @ module.w + module.b, atol=1e-1, rtol=1e-1)

    # 4) Base-class surface: output_shape probe (tiny -> XLA fallback path),
    #    graph bookkeeping, scalar hooks, summary.
    assert module.output_shape == (out_features,)
    other = BaseModuleJAX(input_shape=(out_features,), seed=1)
    other.connect_to_input(module)
    _ = module.summary()
    _ = jax.block_until_ready(module.compute_loss())
    _ = jax.block_until_ready(module.get_intrinsic_reward())
    module.reset()

    print("KERNEL_OK")
</pallas_src>

<mosaic_0001>
module attributes {stable_mosaic.version = 11 : i64} {
  func.func @_affine_kernel_f32(%arg0: i32, %arg1: i32, %arg2: i32, %arg3: memref<32x128xbf16, #tpu.memory_space<vmem>>, %arg4: memref<128x128xbf16, #tpu.memory_space<vmem>>, %arg5: memref<1x128xf32, #tpu.memory_space<vmem>>, %arg6: memref<32x128xf32, #tpu.memory_space<vmem>>) attributes {dimension_semantics = [#tpu.dimension_semantics<parallel>, #tpu.dimension_semantics<parallel>, #tpu.dimension_semantics<arbitrary>], iteration_bounds = array<i64: 1, 1, 1>, scalar_prefetch = 0 : i64, scratch_operands = 0 : i64, tpu.core_type = #tpu.core_type<tc>, window_params = [{transform_indices = @transform_0, window_bounds = array<i64: 32, 128>}, {transform_indices = @transform_1, window_bounds = array<i64: 128, 128>}, {transform_indices = @transform_2, window_bounds = array<i64: 1, 128>}, {transform_indices = @transform_3, window_bounds = array<i64: 32, 128>}]} {
    %c0_i32 = arith.constant 0 : i32
    %0 = arith.cmpi eq, %arg2, %c0_i32 : i32
    %1 = arith.extui %0 : i1 to i32
    %c0_i32_0 = arith.constant 0 : i32
    %2 = arith.cmpi ne, %1, %c0_i32_0 : i32
    scf.if %2 {
      %c0_8 = arith.constant 0 : index
      %c0_9 = arith.constant 0 : index
      %9 = vector.load %arg5[%c0_8, %c0_9] : memref<1x128xf32, #tpu.memory_space<vmem>>, vector<1x128xf32>
      %10 = vector.shape_cast %9 : vector<1x128xf32> to vector<1x128xf32>
      %11 = vector.broadcast %10 : vector<1x128xf32> to vector<32x128xf32>
      %c0_10 = arith.constant 0 : index
      %c0_11 = arith.constant 0 : index
      %12 = vector.load %arg6[%c0_10, %c0_11] : memref<32x128xf32, #tpu.memory_space<vmem>>, vector<32x128xf32>
      tpu.vector_store %arg6[%c0_10, %c0_11], %11 {strides = array<i32>} : memref<32x128xf32, #tpu.memory_space<vmem>>, vector<32x128xf32>,
    } else {
    }
    %c0 = arith.constant 0 : index
    %c0_1 = arith.constant 0 : index
    %3 = vector.load %arg6[%c0, %c0_1] : memref<32x128xf32, #tpu.memory_space<vmem>>, vector<32x128xf32>
    %c0_2 = arith.constant 0 : index
    %c0_3 = arith.constant 0 : index
    %4 = vector.load %arg3[%c0_2, %c0_3] : memref<32x128xbf16, #tpu.memory_space<vmem>>, vector<32x128xbf16>
    %c0_4 = arith.constant 0 : index
    %c0_5 = arith.constant 0 : index
    %5 = vector.load %arg4[%c0_4, %c0_5] : memref<128x128xbf16, #tpu.memory_space<vmem>>, vector<128x128xbf16>
    %cst = arith.constant dense<0.000000e+00> : vector<32x128xf32>
    %6 = tpu.matmul %4, %5, %cst {dimension_numbers = #tpu.dot_dimension_numbers<[1], [0], [0], [1], [0, 0, 1, 1], [], []>} : vector<32x128xbf16>, vector<128x128xbf16>, vector<32x128xf32> -> vector<32x128xf32>
    %7 = arith.addf %3, %6 : vector<32x128xf32>
    %c0_6 = arith.constant 0 : index
    %c0_7 = arith.constant 0 : index
    %8 = vector.load %arg6[%c0_6, %c0_7] : memref<32x128xf32, #tpu.memory_space<vmem>>, vector<32x128xf32>
    tpu.vector_store %arg6[%c0_6, %c0_7], %7 {strides = array<i32>} : memref<32x128xf32, #tpu.memory_space<vmem>>, vector<32x128xf32>,
    return
  }
  func.func @transform_0(%arg0: i32, %arg1: i32, %arg2: i32) -> (i32, i32) {
    %c0_i32 = arith.constant 0 : i32
    return %arg0, %arg2 : i32, i32
  }
  func.func @transform_1(%arg0: i32, %arg1: i32, %arg2: i32) -> (i32, i32) {
    %c0_i32 = arith.constant 0 : i32
    return %arg2, %arg1 : i32, i32
  }
  func.func @transform_2(%arg0: i32, %arg1: i32, %arg2: i32) -> (i32, i32) {
    %c0_i32 = arith.constant 0 : i32
    %c0_i32_0 = arith.constant 0 : i32
    return %c0_i32, %arg1 : i32, i32
  }
  func.func @transform_3(%arg0: i32, %arg1: i32, %arg2: i32) -> (i32, i32) {
    %c0_i32 = arith.constant 0 : i32
    return %arg0, %arg1 : i32, i32
  }
}

</mosaic_0001>

<bundles_post_ra>
// kernel: affine_forward_pallas.1
= control target key start
LH: loop header
LB: loop body
LE: loop exit
PB: predicated region body
PF: predicated region fallthrough
CT: control target
= control target key end

     0   :  { %8 = vsyncpa [#allocation3], 0  ;;  %s331_s0 = inlined_call_operand.vmem [shape: bf16[32,128], index: 0, kind: input, shape index: {}]   ;;  %s332_s1 = inlined_call_operand.hbm [shape: bf16[128,128], index: 1, kind: input, shape index: {}]   ;;  %s333_s2 = inlined_call_operand.vmem [shape: f32[1,128], index: 2, kind: input, shape index: {}]   ;;  %s334_s3 = inlined_call_operand.hbm [shape: f32[32,128], index: 3, kind: output, shape index: {}]  }
   0x1   :  { %9 = vsyncpa [#allocation4], 0  ;;  %s16_s14 = sshll.u32 %s332_s1, 4  ;;  %s290_s15 = smov [#allocation2]   ;;  %s17_s14 = int_to_ptr.hbm [resolvable:$true] %s16_s14 }
   0x2   :  { %s18_s16 = sshll.u32 %s290_s15, 4  ;;  %s291_s17 = smov 64   ;;  %s19_s16 = int_to_ptr.vmem [resolvable:$true] %s18_s16 }
   0x3   :  { %s292_s18 = smov 4  }
   0x4   :  { %24 = dma.hbm_to_vmem [thread:$0]  %s17_s14, 1024, %s19_s16, [#allocation3], %s291_s17, %s291_s17, %s292_s18  }
   0x5   :  { %286 = dma.done.wait [#allocation3], 1024  }
   0x6   :  { %287 = vsyncadd [#allocation3], 4294966272  ;;  %v222_v0 = vld [vmem:[#allocation2 + $0x38] sm:$0xff]  ;;  %v221_v1 = vld [vmem:[#allocation2 + $0x30] sm:$0xff]  ;;  %s293_s24 = smov [#allocation5]   ;;  %s295_s28 = smov 8  }
   0x7   :  { %127 = vmatpush.bf16.msra.mxu0 %v222_v0  ;;  %223 = vmatpush.bf16.msra.mxu1 %v222_v0  ;;  %v220_v2 = vld [vmem:[#allocation2 + $0x28] sm:$0xff]  ;;  %v219_v3 = vld [vmem:[#allocation2 + $0x20] sm:$0xff]  ;;  %v218_v4 = vld [vmem:[#allocation2 + $0x18] sm:$0xff]  ;;  %s158_s25 = sshll.u32 %s293_s24, 4  ;;  %s159_s25 = int_to_ptr.vmem [resolvable:$true] %s158_s25 }
   0x8   :  { %v217_v5 = vld [vmem:[#allocation2 + $0x10] sm:$0xff]  ;;  %v216_v6 = vld [vmem:[#allocation2 + $0x8] sm:$0xff]  ;;  %v215_v7 = vld [vmem:[#allocation2] sm:$0xff] }
   0x9   :  { %v213_v8 = vld [vmem:[%s331_s0] sm:$0xff]  ;;  %v214_v9 = vld [vmem:[%s331_s0 + $0x8] sm:$0xff]  ;;  %s160_s0 = sshll.u32 %s334_s3, 4  ;;  %s161_s0 = int_to_ptr.hbm [resolvable:$true] %s160_s0 }
   0xa   :  { %v237_v10 = vld [vmem:[%s333_s2] ss:$0 sm:$0xff]  ;;  %s294_s2 = smov 128  }
   0xb   :  { %128 = vmatpush.bf16.msra.mxu0 %v221_v1  ;;  %224 = vmatpush.bf16.msra.mxu1 %v221_v1 }
   0xf   :  { %129 = vmatpush.bf16.msra.mxu0 %v220_v2  ;;  %225 = vmatpush.bf16.msra.mxu1 %v220_v2 }
  0x13   :  { %130 = vmatpush.bf16.msra.mxu0 %v219_v3  ;;  %226 = vmatpush.bf16.msra.mxu1 %v219_v3 }
  0x17   :  { %131 = vmatpush.bf16.msra.mxu0 %v218_v4  ;;  %227 = vmatpush.bf16.msra.mxu1 %v218_v4 }
  0x1b   :  { %132 = vmatpush.bf16.msra.mxu0 %v217_v5  ;;  %228 = vmatpush.bf16.msra.mxu1 %v217_v5 }
  0x1f   :  { %133 = vmatpush.bf16.msra.mxu0 %v216_v6  ;;  %229 = vmatpush.bf16.msra.mxu1 %v216_v6 }
  0x23   :  { %134 = vmatpush.bf16.msra.mxu0 %v215_v7  ;;  %230 = vmatpush.bf16.msra.mxu1 %v215_v7 }
  0x26   :  { %135 = vmatmul.bf16.vlgmr.msra.gmra.mxu0 %v213_v8  ;;  %140 = vmatmul.bf16.vlgmr.msra.gmra.mxu1 %v214_v9 }
  0xa3   :  { %v136_v11 = vpop.f32.mrf.mxu0  ;;  %v141_v12 = vpop.f32.mrf.mxu1 }
  0xa4   :  { %v146_v13 = vadd.f32 %v237_v10, %v136_v11  ;;  %v148_v14 = vadd.f32 %v237_v10, %v141_v12 }
  0xa6   :  { %150 = vst [vmem:[#allocation5] sm:$0xff] %v146_v13 }
  0xa7   :  { %152 = vst [vmem:[#allocation5 + $0x10] sm:$0xff] %v148_v14 }
  0xab   :  { %v138_v15 = vpop.f32.mrf.mxu0  ;;  %v143_v16 = vpop.f32.mrf.mxu1 }
  0xac   :  { %v147_v17 = vadd.f32 %v237_v10, %v138_v15  ;;  %v149_v18 = vadd.f32 %v237_v10, %v143_v16 }
  0xae   :  { %151 = vst [vmem:[#allocation5 + $0x8] sm:$0xff] %v147_v17 }
  0xaf   :  { %153 = vst [vmem:[#allocation5 + $0x18] sm:$0xff] %v149_v18 }
  0xb0   :  { %166 = dma.vmem_to_hbm [thread:$0]  %s159_s25, 512, %s161_s0, [#allocation4], %s294_s2, %s294_s2, %s295_s28  }
  0xb1   :  { %288 = dma.done.wait [#allocation4], 512  }
  0xb2   :  { %289 = vsyncadd [#allocation4], 4294966784 }
  0xb3   :  { %171 = vsyncpa [#allocation3], 1 }
  0xb4   :  { %172 = vsyncpa [#allocation4], 1 }

</bundles_post_ra>
